<compile_context>
chip_gen: v7x
topology: tpu7x:2x2x1
jax: 0.10.0
libtpu: 0.0.40
codegen_flags: <defaults>
</compile_context>

<pallas_src>
import jax
import jax.numpy as jnp
from jax.experimental import pallas as pl
from jax.experimental.pallas import tpu as pltpu


def _round_up(x, m):
    return ((x + m - 1) // m) * m


def recommender_kernel(xt_ref, w1t_ref, b1t_ref, w2t_ref, b2t_ref, out_ref):
    # xt : (D, TB)        packed [user | food]^T tile
    # w1t: (2H, D), b1t: (2H, 1)   block-diagonal first layer (transposed)
    # w2t: (2F, 2H), b2t: (2F, 1)  block-diagonal second layer (transposed)
    # out: (1, TB)        lane-dense cosine similarity row

    # --- fused towers: Linear -> ReLU -> Linear (both towers in one matmul pair) ---
    h = jnp.dot(w1t_ref[...], xt_ref[...],
                preferred_element_type=jnp.float32) + b1t_ref[...]        # (2H, TB)
    h = jnp.maximum(h, 0.0)
    uf = jnp.dot(w2t_ref[...], h,
                 preferred_element_type=jnp.float32) + b2t_ref[...]       # (2F, TB)

    # --- split back into the two tower outputs (clean sublane slices at mult. of 8) ---
    half = uf.shape[0] // 2
    u = uf[:half, :]                                                      # (F, TB)
    f = uf[half:, :]                                                      # (F, TB)

    # --- cosine similarity along the feature (sublane) dim; eps=1e-8 like torch ---
    eps = jnp.float32(1e-8)
    dot = jnp.sum(u * f, axis=0, keepdims=True)                           # (1, TB)
    nu2 = jnp.sum(u * u, axis=0, keepdims=True)
    nf2 = jnp.sum(f * f, axis=0, keepdims=True)
    denom = jnp.maximum(jnp.sqrt(nu2) * jnp.sqrt(nf2), eps)               # sqrt on EUP
    out_ref[...] = (dot / denom).astype(out_ref.dtype)


def recommender_forward(user, food, params, *, tile_b=2048):
    (w1u, b1u, w2u, b2u, w1f, b1f, w2f, b2f) = params
    B = user.shape[0]
    user_dim = user.shape[1]
    food_dim = food.shape[1]
    hidden = w1u.shape[1]          # 32
    out_dim = w2u.shape[1]         # 16
    D = user_dim + food_dim

    # ---- pack both towers into one block-diagonal (transposed) MLP ----
    w1t = jnp.zeros((2 * hidden, D), jnp.float32)
    w1t = w1t.at[:hidden, :user_dim].set(w1u.T)
    w1t = w1t.at[hidden:, user_dim:].set(w1f.T)
    b1t = jnp.concatenate([b1u, b1f], axis=1).T                           # (2H, 1)

    w2t = jnp.zeros((2 * out_dim, 2 * hidden), jnp.float32)
    w2t = w2t.at[:out_dim, :hidden].set(w2u.T)
    w2t = w2t.at[out_dim:, hidden:].set(w2f.T)
    b2t = jnp.concatenate([b2u, b2f], axis=1).T                           # (2F, 1)

    # ---- batch tiling (pad ragged batch; slice off afterwards) ----
    TB = min(tile_b, _round_up(B, 8))
    if TB < B:                       # multi-tile path: keep lane blocks 128-aligned
        TB = _round_up(TB, 128)
    B_pad = _round_up(B, TB)
    num_tiles = B_pad // TB

    x = jnp.concatenate([user, food], axis=1)                             # (B, D)
    if B_pad != B:
        x = jnp.pad(x, ((0, B_pad - B), (0, 0)))
    xt = x.T                                                              # (D, B_pad)

    cost = pl.CostEstimate(
        flops=int(B_pad * (2 * D * 2 * hidden + 2 * (2 * hidden) * (2 * out_dim)
                           + 8 * out_dim)),
        transcendentals=int(2 * B_pad),
        bytes_accessed=int(B_pad * (D + 1) * 4
                           + (w1t.size + b1t.size + w2t.size + b2t.size) * 4),
    )

    out = pl.pallas_call(
        recommender_kernel,
        out_shape=jax.ShapeDtypeStruct((1, B_pad), jnp.float32),
        grid=(num_tiles,),
        in_specs=[
            pl.BlockSpec((D, TB), lambda i: (0, i)),          # packed input tile
            pl.BlockSpec(w1t.shape, lambda i: (0, 0)),        # VMEM-resident weights
            pl.BlockSpec(b1t.shape, lambda i: (0, 0)),
            pl.BlockSpec(w2t.shape, lambda i: (0, 0)),
            pl.BlockSpec(b2t.shape, lambda i: (0, 0)),
        ],
        out_specs=pl.BlockSpec((1, TB), lambda i: (0, i)),    # lane-dense output row
        compiler_params=pltpu.CompilerParams(
            dimension_semantics=("parallel",)),
        cost_estimate=cost,
    )(xt, w1t, b1t, w2t, b2t)

    return out[0, :B].reshape(B, 1)


def init_params(key, user_dim, food_dim, hidden=32, out=16):
    """Deterministic synthetic init (shapes match the PyTorch module)."""
    ks = jax.random.split(key, 8)

    def lin(kw, kb, fan_in, fan_out):
        # torch.nn.Linear default: U(-1/sqrt(fan_in), 1/sqrt(fan_in))
        bound = 1.0 / jnp.sqrt(jnp.float32(fan_in))
        w = jax.random.uniform(kw, (fan_in, fan_out), jnp.float32, -bound, bound)
        b = jax.random.uniform(kb, (1, fan_out), jnp.float32, -bound, bound)
        return w, b

    w1u, b1u = lin(ks[0], ks[1], user_dim, hidden)
    w2u, b2u = lin(ks[2], ks[3], hidden, out)
    w1f, b1f = lin(ks[4], ks[5], food_dim, hidden)
    w2f, b2f = lin(ks[6], ks[7], hidden, out)
    return (w1u, b1u, w2u, b2u, w1f, b1f, w2f, b2f)


def reference_forward(user, food, params):
    """Pure-JAX reference matching the PyTorch module (un-fused towers)."""
    (w1u, b1u, w2u, b2u, w1f, b1f, w2f, b2f) = params
    u = jnp.maximum(user @ w1u + b1u, 0.0) @ w2u + b2u
    f = jnp.maximum(food @ w1f + b1f, 0.0) @ w2f + b2f
    dot = jnp.sum(u * f, axis=-1, keepdims=True)
    nu = jnp.linalg.norm(u, axis=-1, keepdims=True)
    nf = jnp.linalg.norm(f, axis=-1, keepdims=True)
    return dot / jnp.maximum(nu * nf, 1e-8)


if __name__ == "__main__":
    B, USER_DIM, FOOD_DIM = 8, 12, 20

    key = jax.random.PRNGKey(0)
    k_user, k_food, k_params, k2u, k2f = jax.random.split(key, 5)

    user = jax.random.normal(k_user, (B, USER_DIM), jnp.float32)
    food = jax.random.normal(k_food, (B, FOOD_DIM), jnp.float32)
    params = init_params(k_params, USER_DIM, FOOD_DIM)

    out = recommender_forward(user, food, params)
    out = jax.block_until_ready(out)
    ref = reference_forward(user, food, params)
    assert out.shape == (B, 1), out.shape
    assert jnp.allclose(out, ref, atol=1e-4, rtol=1e-4), (out, ref)

    # Exercise the multi-tile, ragged-batch path (300 rows -> 3 tiles of 128, padded).
    B2 = 300
    user2 = jax.random.normal(k2u, (B2, USER_DIM), jnp.float32)
    food2 = jax.random.normal(k2f, (B2, FOOD_DIM), jnp.float32)
    out2 = jax.block_until_ready(
        recommender_forward(user2, food2, params, tile_b=128))
    ref2 = reference_forward(user2, food2, params)
    assert out2.shape == (B2, 1), out2.shape
    assert jnp.allclose(out2, ref2, atol=1e-4, rtol=1e-4), (out2, ref2)

    print("KERNEL_OK")
</pallas_src>

<mosaic_0001>
module attributes {stable_mosaic.version = 11 : i64} {
  func.func @recommender_kernel(%arg0: i32, %arg1: memref<32x8xf32, #tpu.memory_space<vmem>>, %arg2: memref<64x32xf32, #tpu.memory_space<vmem>>, %arg3: memref<64x1xf32, #tpu.memory_space<vmem>>, %arg4: memref<32x64xf32, #tpu.memory_space<vmem>>, %arg5: memref<32x1xf32, #tpu.memory_space<vmem>>, %arg6: memref<1x8xf32, #tpu.memory_space<vmem>>) attributes {dimension_semantics = [#tpu.dimension_semantics<parallel>], iteration_bounds = array<i64: 1>, scalar_prefetch = 0 : i64, scratch_operands = 0 : i64, tpu.core_type = #tpu.core_type<tc>, window_params = [{transform_indices = @transform_0, window_bounds = array<i64: 32, 8>}, {pipeline_mode = #tpu.pipeline_mode<synchronous>, transform_indices = @transform_1, window_bounds = array<i64: 64, 32>}, {pipeline_mode = #tpu.pipeline_mode<synchronous>, transform_indices = @transform_2, window_bounds = array<i64: 64, 1>}, {pipeline_mode = #tpu.pipeline_mode<synchronous>, transform_indices = @transform_3, window_bounds = array<i64: 32, 64>}, {pipeline_mode = #tpu.pipeline_mode<synchronous>, transform_indices = @transform_4, window_bounds = array<i64: 32, 1>}, {transform_indices = @transform_5, window_bounds = array<i64: 1, 8>}]} {
    %c0 = arith.constant 0 : index
    %c0_0 = arith.constant 0 : index
    %0 = vector.load %arg2[%c0, %c0_0] : memref<64x32xf32, #tpu.memory_space<vmem>>, vector<64x32xf32>
    %c0_1 = arith.constant 0 : index
    %c0_2 = arith.constant 0 : index
    %1 = vector.load %arg1[%c0_1, %c0_2] : memref<32x8xf32, #tpu.memory_space<vmem>>, vector<32x8xf32>
    %cst = arith.constant dense<0.000000e+00> : vector<64x8xf32>
    %2 = tpu.matmul %0, %1, %cst {dimension_numbers = #tpu.dot_dimension_numbers<[1], [0], [0], [1], [0, 0, 1, 1], [], []>} : vector<64x32xf32>, vector<32x8xf32>, vector<64x8xf32> -> vector<64x8xf32>
    %c0_3 = arith.constant 0 : index
    %c0_4 = arith.constant 0 : index
    %3 = vector.load %arg3[%c0_3, %c0_4] : memref<64x1xf32, #tpu.memory_space<vmem>>, vector<64x1xf32>
    %4 = vector.broadcast %3 : vector<64x1xf32> to vector<64x8xf32>
    %5 = arith.addf %2, %4 : vector<64x8xf32>
    %cst_5 = arith.constant 0.000000e+00 : f32
    %6 = vector.broadcast %cst_5 : f32 to vector<64x8xf32>
    %7 = arith.maximumf %5, %6 : vector<64x8xf32>
    %c0_6 = arith.constant 0 : index
    %c0_7 = arith.constant 0 : index
    %8 = vector.load %arg4[%c0_6, %c0_7] : memref<32x64xf32, #tpu.memory_space<vmem>>, vector<32x64xf32>
    %cst_8 = arith.constant dense<0.000000e+00> : vector<32x8xf32>
    %9 = tpu.matmul %8, %7, %cst_8 {dimension_numbers = #tpu.dot_dimension_numbers<[1], [0], [0], [1], [0, 0, 1, 1], [], []>} : vector<32x64xf32>, vector<64x8xf32>, vector<32x8xf32> -> vector<32x8xf32>
    %c0_9 = arith.constant 0 : index
    %c0_10 = arith.constant 0 : index
    %10 = vector.load %arg5[%c0_9, %c0_10] : memref<32x1xf32, #tpu.memory_space<vmem>>, vector<32x1xf32>
    %11 = vector.broadcast %10 : vector<32x1xf32> to vector<32x8xf32>
    %12 = arith.addf %9, %11 : vector<32x8xf32>
    %13 = vector.extract_strided_slice %12 {offsets = [0, 0], sizes = [16, 8], strides = [1, 1]} : vector<32x8xf32> to vector<16x8xf32>
    %14 = vector.extract_strided_slice %12 {offsets = [16, 0], sizes = [16, 8], strides = [1, 1]} : vector<32x8xf32> to vector<16x8xf32>
    %15 = arith.mulf %13, %14 : vector<16x8xf32>
    %cst_11 = arith.constant dense<0.000000e+00> : vector<8xf32>
    %16 = vector.multi_reduction <add>, %15, %cst_11 [0] : vector<16x8xf32> to vector<8xf32>
    %17 = vector.shape_cast %16 : vector<8xf32> to vector<1x8xf32>
    %18 = arith.mulf %13, %13 : vector<16x8xf32>
    %cst_12 = arith.constant dense<0.000000e+00> : vector<8xf32>
    %19 = vector.multi_reduction <add>, %18, %cst_12 [0] : vector<16x8xf32> to vector<8xf32>
    %20 = vector.shape_cast %19 : vector<8xf32> to vector<1x8xf32>
    %21 = arith.mulf %14, %14 : vector<16x8xf32>
    %cst_13 = arith.constant dense<0.000000e+00> : vector<8xf32>
    %22 = vector.multi_reduction <add>, %21, %cst_13 [0] : vector<16x8xf32> to vector<8xf32>
    %23 = vector.shape_cast %22 : vector<8xf32> to vector<1x8xf32>
    %24 = math.sqrt %20 : vector<1x8xf32>
    %25 = math.sqrt %23 : vector<1x8xf32>
    %26 = arith.mulf %24, %25 : vector<1x8xf32>
    %cst_14 = arith.constant 9.99999993E-9 : f32
    %27 = vector.broadcast %cst_14 : f32 to vector<1x8xf32>
    %28 = arith.maximumf %26, %27 : vector<1x8xf32>
    %29 = arith.divf %17, %28 : vector<1x8xf32>
    %c0_15 = arith.constant 0 : index
    %c0_16 = arith.constant 0 : index
    %30 = vector.load %arg6[%c0_15, %c0_16] : memref<1x8xf32, #tpu.memory_space<vmem>>, vector<1x8xf32>
    tpu.vector_store %arg6[%c0_15, %c0_16], %29 {strides = array<i32>} : memref<1x8xf32, #tpu.memory_space<vmem>>, vector<1x8xf32>,
    return
  }
  func.func @transform_0(%arg0: i32) -> (i32, i32) {
    %c0_i32 = arith.constant 0 : i32
    %c0_i32_0 = arith.constant 0 : i32
    return %c0_i32, %arg0 : i32, i32
  }
  func.func @transform_1(%arg0: i32) -> (i32, i32) {
    %c0_i32 = arith.constant 0 : i32
    %c0_i32_0 = arith.constant 0 : i32
    %c0_i32_1 = arith.constant 0 : i32
    return %c0_i32, %c0_i32_0 : i32, i32
  }
  func.func @transform_2(%arg0: i32) -> (i32, i32) {
    %c0_i32 = arith.constant 0 : i32
    %c0_i32_0 = arith.constant 0 : i32
    %c0_i32_1 = arith.constant 0 : i32
    return %c0_i32, %c0_i32_0 : i32, i32
  }
  func.func @transform_3(%arg0: i32) -> (i32, i32) {
    %c0_i32 = arith.constant 0 : i32
    %c0_i32_0 = arith.constant 0 : i32
    %c0_i32_1 = arith.constant 0 : i32
    return %c0_i32, %c0_i32_0 : i32, i32
  }
  func.func @transform_4(%arg0: i32) -> (i32, i32) {
    %c0_i32 = arith.constant 0 : i32
    %c0_i32_0 = arith.constant 0 : i32
    %c0_i32_1 = arith.constant 0 : i32
    return %c0_i32, %c0_i32_0 : i32, i32
  }
  func.func @transform_5(%arg0: i32) -> (i32, i32) {
    %c0_i32 = arith.constant 0 : i32
    %c0_i32_0 = arith.constant 0 : i32
    return %c0_i32, %arg0 : i32, i32
  }
}

</mosaic_0001>

<bundles_post_ra>
// kernel: tpu_custom_call.1
= control target key start
LH: loop header
LB: loop body
LE: loop exit
PB: predicated region body
PF: predicated region fallthrough
CT: control target
= control target key end

     0   :  { %vm81_vm0 = vcmask 261120   ;;  %v549_v6 = vmov 0   ;;  %s695_s0 = inlined_call_operand.vmem [shape: f32[32,8], index: 0, kind: input, shape index: {}]   ;;  %s696_s1 = inlined_call_operand.vmem [shape: f32[64,32], index: 1, kind: input, shape index: {}]   ;;  %s697_s2 = inlined_call_operand.vmem [shape: f32[64,1], index: 2, kind: input, shape index: {}]   ;;  %s698_s3 = inlined_call_operand.vmem [shape: f32[32,64], index: 3, kind: input, shape index: {}]   ;;  %s699_s4 = inlined_call_operand.vmem [shape: f32[32,1], index: 4, kind: input, shape index: {}]   ;;  %s700_s5 = inlined_call_operand.hbm [shape: f32[1,8], index: 5, kind: output, shape index: {}]  }
   0x1   :  { %v29_v0 = vld [vmem:[%s695_s0] sm:$0xff]  ;;  %v30_v1 = vld [vmem:[%s695_s0 + $0x8] sm:$0xff]  ;;  %v31_v2 = vld [vmem:[%s695_s0 + $0x10] sm:$0xff]  ;;  %517 = vset.pattern.permute.xlu0 %v549_v6  ;;  %518 = vset.pattern.permute.xlu1 %v549_v6 }
   0x2   :  { %v491_v3 = vpack.c.bf16 %v30_v1, %v29_v0  ;;  %v32_v4 = vld [vmem:[%s695_s0 + $0x18] sm:$0xff]  ;;  %v21_v5 = vld [vmem:[%s696_s1] sm:$0xff]  ;;  %v35_v9 = vld [vmem:[%s697_s2 + $0x10] sm:$0xff] }
   0x3   :  { %v495_v7 = vpack.c.bf16 %v32_v4, %v31_v2  ;;  %457 = vmatprep.mubr.msk.f32.mxu0 %vm81_vm0, %v21_v5  ;;  %v33_v8 = vld [vmem:[%s697_s2] sm:$0xff]  ;;  %53 = vperm.xlu1 %518, %v35_v9   ;;  %v34_v10 = vld [vmem:[%s697_s2 + $0x8] sm:$0xff]  ;;  %v36_v11 = vld [vmem:[%s697_s2 + $0x18] sm:$0xff] }
   0x4   :  { %492 = vmatprep.subr.bf16.mxu0 %v491_v3  ;;  %43 = vperm.xlu0 %517, %v33_v8   ;;  %v22_v12 = vld [vmem:[%s696_s1 + $0x8] sm:$0xff] }
   0x5   :  { %494 = vmatpush3.bf16.msra.mxu0 %v491_v3 }
   0x6   :  { %496 = vmatprep.subr.bf16.mxu0 %v495_v7 }
   0x9   :  { %498 = vmatpush3.bf16.msra.mxu0 %v495_v7 }
   0xa   :  { %10 = vsyncpa [#allocation3], 0  ;;  %v23_v13 = vld [vmem:[%s696_s1 + $0x10] sm:$0xff]  ;;  %48 = vperm.xlu0 %517, %v34_v10   ;;  %58 = vperm.xlu1 %518, %v36_v11   ;;  %v37_v14 = vld [vmem:[%s697_s2 + $0x20] sm:$0xff]  ;;  %vm247_vm1 = vcmask 523264   ;;  %vm347_vm2 = vcmask 64512  }
   0xb   :  { %v38_v15 = vld [vmem:[%s697_s2 + $0x28] sm:$0xff]  ;;  %v24_v16 = vld [vmem:[%s696_s1 + $0x18] sm:$0xff]  ;;  %v25_v17 = vld [vmem:[%s696_s1 + $0x20] sm:$0xff]  ;;  %vm397_vm7 = vcmask 57344  }
   0xc   :  { %458 = vmatmul.mubr.msk.f32.vlgmr.msra.gmra.mrb[0].mxu0 %vm81_vm0, %v22_v12  ;;  %v39_v18 = vld [vmem:[%s697_s2 + $0x30] sm:$0xff]  ;;  %v40_v19 = vld [vmem:[%s697_s2 + $0x38] sm:$0xff]  ;;  %v26_v20 = vld [vmem:[%s696_s1 + $0x28] sm:$0xff] }
   0xd   :  { %460 = vmatprep.mubr.msk.f32.mxu0 %vm81_vm0, %v23_v13  ;;  %v27_v21 = vld [vmem:[%s696_s1 + $0x30] sm:$0xff]  ;;  %v223_v22 = vld [vmem:[%s699_s4] sm:$0xff]  ;;  %v224_v23 = vld [vmem:[%s699_s4 + $0x8] sm:$0xff] }
   0xe   :  { %63 = vperm.xlu0 %517, %v37_v14   ;;  %68 = vperm.xlu1 %518, %v38_v15   ;;  %v28_v24 = vld [vmem:[%s696_s1 + $0x38] sm:$0xff]  ;;  %v225_v25 = vld [vmem:[%s699_s4 + $0x10] sm:$0xff]  ;;  %v219_v27 = vld [vmem:[%s698_s3] sm:$0xff] }
   0xf   :  { %v226_v26 = vld [vmem:[%s699_s4 + $0x18] sm:$0xff]  ;;  %485 = vmatprep.mubr.msk.f32.mxu1 %vm247_vm1, %v219_v27  ;;  %v220_v0 = vld [vmem:[%s698_s3 + $0x8] sm:$0xff]  ;;  %v221_v1 = vld [vmem:[%s698_s3 + $0x10] sm:$0xff] }
  0x10   :  { %461 = vmatmul.mubr.msk.f32.gmra.mrb[2].mxu0 %vm81_vm0, %v24_v16  ;;  %v222_v2 = vld [vmem:[%s698_s3 + $0x18] sm:$0xff]  ;;  %s550_s3 = smov [#allocation2]  }
  0x11   :  { %463 = vmatprep.mubr.msk.f32.mxu0 %vm81_vm0, %v25_v17  ;;  %s405_s19 = sshll.u32 %s550_s3, 4  ;;  %s406_s19 = int_to_ptr.vmem [resolvable:$true] %s405_s19 }
  0x12   :  { %73 = vperm.xlu0 %517, %v39_v18   ;;  %78 = vperm.xlu1 %518, %v40_v19   ;;  %s525_s20 = scalar_lea.vmem %s406_s19, 16  ;;  %s529_s21 = scalar_lea.vmem %s406_s19, 32 }
  0x13   :  { %p526_p0 = scmp.ne.s32.totalorder %s406_s19, %s525_s20  ;;  %p530_p1 = scmp.lt.s32.totalorder %s406_s19, %s406_s19 }
  0x14   :  { %464 = vmatmul.mubr.msk.f32.gmra.mrb[4].mxu0 %vm81_vm0, %v26_v20  ;;  %p531_p2 = scmp.lt.s32.totalorder %s529_s21, %s525_s20 }
  0x15   :  { %466 = vmatprep.mubr.msk.f32.mxu0 %vm81_vm0, %v27_v21 }
  0x16   :  { %229 = vperm.xlu0 %517, %v223_v22   ;;  %234 = vperm.xlu1 %518, %v224_v23   ;;  %p532_p3 = por %p531_p2, %p530_p1 }
  0x18   :  { %467 = vmatmul.mubr.msk.f32.gmra.mrb[6].mxu0 %vm81_vm0, %v28_v24  ;;  %p533_p4 = pnand %p532_p3, %p526_p0 }
  0x1a   :  { %239 = vperm.xlu0 %517, %v225_v25   ;;  %244 = vperm.xlu1 %518, %v226_v26  }
  0x82   :  { %v54_v29 = vpop.permute.xlu1 %53 }
  0x83   :  { %v44_v28 = vpop.permute.xlu0 %43 }
  0x89   :  { %v49_v30 = vpop.permute.xlu0 %48  ;;  %v59_v31 = vpop.permute.xlu1 %58 }
  0x8d   :  { %v69_v41 = vpop.permute.xlu1 %68  ;;  %v64_v44 = vpop.permute.xlu0 %63 }
  0x91   :  { %v79_v53 = vpop.permute.xlu1 %78  ;;  %v74_v56 = vpop.permute.xlu0 %73 }
  0x95   :  { %v235_v3 = vpop.permute.xlu1 %234  ;;  %v230_v4 = vpop.permute.xlu0 %229 }
  0x99   :  { %v245_v10 = vpop.permute.xlu1 %244  ;;  %v240_v13 = vpop.permute.xlu0 %239 }
  0xdf   :  { %v459_v32 = vpop.f32.mrb[0].mxu0 }
  0xe0   :  { %v178_v33 = vadd.f32 %v459_v32, %v49_v30  ;;  %v172_v34 = vpop.f32.mrb[1].mxu0 }
  0xe1   :  { %v173_v35 = vadd.f32 %v172_v34, %v44_v28 }
  0xe2   :  { %v212_v36 = vmax.f32 %v178_v33, 0.0 }
  0xe3   :  { %v211_v37 = vmax.f32 %v173_v35, 0.0  ;;  %v462_v38 = vpop.f32.mrb[2].mxu0 }
  0xe4   :  { %v188_v39 = vadd.f32 %v462_v38, %v59_v31  ;;  %v182_v40 = vpop.f32.mrb[3].mxu0 }
  0xe5   :  { %v183_v42 = vadd.f32 %v182_v40, %v54_v29  ;;  %v499_v43 = vpack.c.bf16 %v212_v36, %v211_v37 }
  0xe6   :  { %v214_v45 = vmax.f32 %v188_v39, 0.0 }
  0xe7   :  { %v213_v46 = vmax.f32 %v183_v42, 0.0  ;;  %v465_v47 = vpop.f32.mrb[4].mxu0  ;;  %500 = vmatprep.subr.bf16.mxu1 %v499_v43 }
  0xe8   :  { %v198_v48 = vadd.f32 %v465_v47, %v69_v41  ;;  %v192_v49 = vpop.f32.mrb[5].mxu0  ;;  %502 = vmatpush3.bf16.msra.mxu1 %v499_v43 }
  0xe9   :  { %v503_v50 = vpack.c.bf16 %v214_v45, %v213_v46  ;;  %v193_v51 = vadd.f32 %v192_v49, %v64_v44 }
  0xea   :  { %v216_v52 = vmax.f32 %v198_v48, 0.0 }
  0xeb   :  { %v215_v54 = vmax.f32 %v193_v51, 0.0  ;;  %v468_v55 = vpop.f32.mrb[6].mxu0  ;;  %504 = vmatprep.subr.bf16.mxu1 %v503_v50 }
  0xec   :  { %v208_v57 = vadd.f32 %v468_v55, %v79_v53  ;;  %v202_v58 = vpop.f32.mrb[7].mxu0  ;;  %506 = vmatpush3.bf16.msra.mxu1 %v503_v50 }
  0xed   :  { %v507_v59 = vpack.c.bf16 %v216_v52, %v215_v54  ;;  %v203_v60 = vadd.f32 %v202_v58, %v74_v56 }
  0xee   :  { %v218_v61 = vmax.f32 %v208_v57, 0.0 }
  0xef   :  { %v217_v62 = vmax.f32 %v203_v60, 0.0  ;;  %508 = vmatprep.subr.bf16.mxu1 %v507_v59 }
  0xf0   :  { %510 = vmatpush3.bf16.msra.mxu1 %v507_v59 }
  0xf1   :  { %v511_v63 = vpack.c.bf16 %v218_v61, %v217_v62 }
  0xf3   :  { %512 = vmatprep.subr.bf16.mxu1 %v511_v63 }
  0xf4   :  { %514 = vmatpush3.bf16.msra.mxu1 %v511_v63 }
  0xf7   :  { %486 = vmatmul.mubr.msk.f32.vlgmr.msra.gmra.mrb[0].mxu1 %vm247_vm1, %v220_v0 }
  0xf8   :  { %488 = vmatprep.mubr.msk.f32.mxu1 %vm247_vm1, %v221_v1 }
  0xfb   :  { %489 = vmatmul.mubr.msk.f32.gmra.mrb[2].mxu1 %vm247_vm1, %v222_v2 }
 0x1ca   :  { %v487_v5 = vpop.f32.mrb[0].mxu1 }
 0x1cb   :  { %v332_v6 = vadd.f32 %v487_v5, %v235_v3  ;;  %v326_v7 = vpop.f32.mrb[1].mxu1 }
 0x1cc   :  { %v327_v8 = vadd.f32 %v326_v7, %v230_v4 }
 0x1cd   :  { %v358_v9 = vmul.f32 %v332_v6, %v332_v6 }
 0x1ce   :  { %v357_v11 = vmul.f32 %v327_v8, %v327_v8  ;;  %v490_v12 = vpop.f32.mrb[2].mxu1 }
 0x1cf   :  { %v360_v14 = vsel %vm347_vm2, %v358_v9, 0.0  ;;  %v342_v15 = vadd.f32 %v490_v12, %v245_v10  ;;  %v336_v16 = vpop.f32.mrb[3].mxu1 }
 0x1d0   :  { %v359_v17 = vsel %vm347_vm2, %v357_v11, 0.0  ;;  %v337_v18 = vadd.f32 %v336_v16, %v240_v13 }
 0x1d1   :  { %v361_v19 = vadd.f32 %v360_v14, %v359_v17  ;;  %v346_v20 = vmul.f32 %v342_v15, %v332_v6  ;;  %v369_v21 = vmul.f32 %v342_v15, %v342_v15 }
 0x1d2   :  { %v345_v22 = vmul.f32 %v337_v18, %v327_v8  ;;  %v368_v23 = vmul.f32 %v337_v18, %v337_v18 }
 0x1d3   :  { %v362_v24 = vrot.slane %v361_v19, 4  ;;  %v349_v25 = vsel %vm347_vm2, %v346_v20, 0.0  ;;  %v371_v26 = vsel %vm347_vm2, %v369_v21, 0.0 }
 0x1d4   :  { %v348_v27 = vsel %vm347_vm2, %v345_v22, 0.0  ;;  %v370_v28 = vsel %vm347_vm2, %v368_v23, 0.0 }
 0x1d5   :  { %v363_v29 = vadd.f32 %v362_v24, %v361_v19  ;;  %v350_v30 = vadd.f32 %v349_v25, %v348_v27  ;;  %v372_v31 = vadd.f32 %v371_v26, %v370_v28 }
 0x1d7   :  { %v364_v32 = vrot.slane %v363_v29, 2  ;;  %v373_v33 = vrot.slane %v372_v31, 4  ;;  %v351_v44 = vrot.slane %v350_v30, 4 }
 0x1d9   :  { %v365_v34 = vadd.f32 %v364_v32, %v363_v29  ;;  %v374_v35 = vadd.f32 %v373_v33, %v372_v31  ;;  %v352_v48 = vadd.f32 %v351_v44, %v350_v30 }
 0x1db   :  { %v366_v36 = vrot.slane %v365_v34, 1  ;;  %v375_v37 = vrot.slane %v374_v35, 2  ;;  %v353_v55 = vrot.slane %v352_v48, 2 }
 0x1dd   :  { %v367_v38 = vadd.f32 %v366_v36, %v365_v34  ;;  %v376_v39 = vadd.f32 %v375_v37, %v374_v35  ;;  %v354_v57 = vadd.f32 %v353_v55, %v352_v48 }
 0x1df   :  { %519 = vrsqrt.f32 %v367_v38  ;;  %v377_v40 = vrot.slane %v376_v39, 1  ;;  %vm381_vm3 = vcmp.eq.f32.partialorder %v367_v38, inf  ;;  %v384_v49 = vand.u32 2147483648, %v367_v38 }
 0x1e0   :  { %vm383_vm5 = vcmp.eq.f32.partialorder %v367_v38, 0.0  ;;  %v355_v58 = vrot.slane %v354_v57, 1 }
 0x1e1   :  { %v378_v41 = vadd.f32 %v377_v40, %v376_v39 }
 0x1e2   :  { %v356_v59 = vadd.f32 %v355_v58, %v354_v57 }
 0x1e3   :  { %521 = vrsqrt.f32 %v378_v41  ;;  %vm388_vm4 = vcmp.eq.f32.partialorder %v378_v41, inf  ;;  %v391_v50 = vand.u32 2147483648, %v378_v41  ;;  %vm390_vm6 = vcmp.eq.f32.partialorder %v378_v41, 0.0 }
 0x1e9   :  { %v520_v42 = vpop.eup %519 }
 0x1ea   :  { %v380_v43 = vmul.f32 %v520_v42, %v367_v38 }
 0x1ec   :  { %v382_v46 = vsel %vm381_vm3, %v367_v38, %v380_v43 }
 0x1ed   :  { %v522_v45 = vpop.eup %521  ;;  %v385_v52 = vsel %vm383_vm5, %v384_v49, %v382_v46 }
 0x1ee   :  { %v387_v47 = vmul.f32 %v522_v45, %v378_v41 }
 0x1f0   :  { %v389_v51 = vsel %vm388_vm4, %v378_v41, %v387_v47 }
 0x1f1   :  { %v392_v53 = vsel %vm390_vm6, %v391_v50, %v389_v51 }
 0x1f2   :  { %v393_v54 = vmul.f32 %v392_v53, %v385_v52 }
 0x1f4   :  { %v394_v56 = vmax.f32 %v393_v54, 1e-08 }
 0x1f6   :  { %523 = vrcp.f32 %v394_v56 }
 0x200   :  { %v524_v60 = vpop.eup %523 }
 0x201   :  { %v396_v61 = vmul.f32 %v524_v60, %v356_v59 }
 0x203   :  { %398 = vst.msk [vmem:[#allocation2] sm:$0x1] %vm397_vm7, %v396_v61 }
 0x204   :  { %536 = shalt.err (!%p533_p4)
}
 0x205   :  { %s537_s24 = scalar_lea.hbm %s700_s5, 16 }
 0x206   :  { %p538_p5 = scmp.ne.s32.totalorder %s700_s5, %s537_s24  ;;  %p541_p6 = scmp.lt.u32.totalorder %s537_s24, %s700_s5 }
 0x208   :  { %p543_p7 = pnand %p541_p6, %p538_p5 }
 0x20a   :  { %546 = shalt.err (!%p543_p7)
}
 0x20b   :  { %408 = dma.vmem_to_hbm [thread:$0]  %s406_s19, 16, %s700_s5, [#allocation3]  }
 0x20c   :  { %547 = dma.done.wait [#allocation3], 16  }
 0x20d   :  { %548 = vsyncadd [#allocation3], 4294967280 }
 0x20e   :  { %412 = vsyncpa [#allocation3], 1 }

</bundles_post_ra>
